<compile_context>
chip_gen: v6e
topology: v6e:2x2x1
jax: 0.10.0
libtpu: 0.0.40
codegen_flags: <defaults>
</compile_context>

<pallas_src>
import functools
import math

import jax
import jax.numpy as jnp
from jax.experimental import pallas as pl
from jax.experimental.pallas import tpu as pltpu


_GELU_C1 = math.sqrt(2.0 / math.pi)
_GELU_C2 = _GELU_C1 * 0.044715


def _gelu_tanh(x):
    # PyTorch nn.GELU(approximate='tanh'):
    #   0.5 * x * (1 + tanh(sqrt(2/pi) * (x + 0.044715 * x^3)))
    # refactored as u = x * (c1 + c2 * x^2) to drop one multiply per element.
    u = x * (_GELU_C1 + _GELU_C2 * (x * x))
    return 0.5 * x * (1.0 + jnp.tanh(u))


# --------------------------------------------------------------------------
# Kernels
# --------------------------------------------------------------------------
def _mlp_kernel_resident(x_ref, w_fc_ref, b_fc_ref, w_proj_ref, b_proj_ref,
                         o_ref, *, gelu_dtype):
    """Weights fully resident in VMEM; grid = (row_tiles,). No accumulator."""
    h = jnp.dot(x_ref[...], w_fc_ref[...], preferred_element_type=jnp.float32)
    h = h + b_fc_ref[...].astype(jnp.float32)
    g = _gelu_tanh(h.astype(gelu_dtype)).astype(w_proj_ref.dtype)
    out = jnp.dot(g, w_proj_ref[...], preferred_element_type=jnp.float32)
    o_ref[...] = (out + b_proj_ref[...].astype(jnp.float32)).astype(o_ref.dtype)


def _mlp_kernel_chunked(x_ref, w_fc_ref, b_fc_ref, w_proj_ref, b_proj_ref,
                        o_ref, acc_ref, *, gelu_dtype):
    """Hidden dim streamed in chunks; grid = (row_tiles, hidden_chunks)."""
    h_idx = pl.program_id(1)
    n_h = pl.num_programs(1)

    @pl.when(h_idx == 0)
    def _():
        acc_ref[...] = jnp.zeros_like(acc_ref)

    # c_fc chunk: (tm, C) @ (C, th) -> (tm, th), f32 accumulate on the MXU.
    h = jnp.dot(x_ref[...], w_fc_ref[...], preferred_element_type=jnp.float32)
    h = h + b_fc_ref[...].astype(jnp.float32)

    # GELU (tanh approximation) on the VPU/EUP, cast for the second MXU pass.
    g = _gelu_tanh(h.astype(gelu_dtype)).astype(w_proj_ref.dtype)

    # c_proj chunk: (tm, th) @ (th, C) accumulated into (tm, C) f32 scratch.
    acc_ref[...] += jnp.dot(g, w_proj_ref[...], preferred_element_type=jnp.float32)

    @pl.when(h_idx == n_h - 1)
    def _():
        o_ref[...] = (acc_ref[...] + b_proj_ref[...].astype(jnp.float32)).astype(
            o_ref.dtype
        )


# --------------------------------------------------------------------------
# Wrapper
# --------------------------------------------------------------------------
def _round_up(x, m):
    return ((x + m - 1) // m) * m


def _vmem_budget_bytes():
    """~85% of this generation's VMEM (headroom for compiler-internal scratch)."""
    try:
        cap = int(pltpu.get_tpu_info().vmem_capacity_bytes)
    except Exception:
        cap = 64 * 1024 * 1024  # conservative (v7x per-TC size)
    return int(cap * 0.85)


def _pick_hidden_tile(H, th_max, C, wsz, budget):
    """Multiple of 128, <= th_max, whose double-buffered weight chunks fit."""
    H128 = _round_up(H, 128)
    th = min((max(th_max, 128) // 128) * 128, H128)
    # 2x double-buffered (C, th) + (th, C) weight chunks should use <~ half budget.
    while th > 128 and 4 * C * th * wsz > budget // 2:
        th -= 128
    return max(th, 128)


@functools.partial(jax.jit, static_argnames=("tm", "th_max", "weight_resident"))
def mlp_forward(x, w_fc, b_fc, w_proj, b_proj, *, tm=512, th_max=2048,
                weight_resident=None):
    """x: (B, T, C). w_fc: (C, 4C), b_fc: (1, 4C), w_proj: (4C, C), b_proj: (1, C).

    For best performance cast x / weights to bf16 at the call boundary
    (f32 accumulation is kept internally via preferred_element_type).
    """
    B, T, C = x.shape
    H = w_fc.shape[1]  # 4 * C
    M = B * T

    xsz = jnp.dtype(x.dtype).itemsize
    wsz = jnp.dtype(w_fc.dtype).itemsize
    budget = _vmem_budget_bytes()

    # Row tile: multiple of the dtype's sublane pack; ensure >= 2 row tiles
    # (when M allows) so v7x's two TensorCores both get work.
    pack = {4: 8, 2: 16, 1: 32}.get(xsz, 8)
    tm_eff = max(pack, min(tm, _round_up(M, pack)))
    if _round_up(M, tm_eff) // tm_eff < 2 and M > pack:
        tm_eff = _round_up((M + 1) // 2, pack)
    M_pad = _round_up(M, tm_eff)

    x2 = x.reshape(M, C)
    if M_pad != M:
        x2 = jnp.pad(x2, ((0, M_pad - M), (0, 0)))

    # GELU in bf16 when weights are bf16 (v6e/v7x bf16 VPU/EUP), else f32.
    gelu_dtype = jnp.bfloat16 if w_fc.dtype == jnp.bfloat16 else jnp.float32

    # Residency check: full weights + biases (assume double-buffered) + tiles.
    resident_est = (
        2 * tm_eff * C * xsz                      # x tiles (double buffered)
        + 2 * tm_eff * C * xsz                    # output tiles
        + 2 * (C * H + H + H * C + C) * wsz       # full weights + biases
        + tm_eff * H * 4                          # (tm, H) f32 intermediate
        + tm_eff * H * wsz                        # cast copy headroom
    )
    if weight_resident is None:
        weight_resident = resident_est <= budget

    if weight_resident:
        grid = (M_pad // tm_eff,)
        kernel = functools.partial(_mlp_kernel_resident, gelu_dtype=gelu_dtype)
        in_specs = [
            pl.BlockSpec((tm_eff, C), lambda i: (i, 0)),  # x tile
            pl.BlockSpec((C, H), lambda i: (0, 0)),       # w_fc (resident)
            pl.BlockSpec((1, H), lambda i: (0, 0)),       # b_fc
            pl.BlockSpec((H, C), lambda i: (0, 0)),       # w_proj (resident)
            pl.BlockSpec((1, C), lambda i: (0, 0)),       # b_proj
        ]
        out_specs = pl.BlockSpec((tm_eff, C), lambda i: (i, 0))
        scratch_shapes = []
        dims = ("parallel",)
        est = resident_est
        args = (x2, w_fc, b_fc, w_proj, b_proj)
    else:
        # Hidden-chunked fallback: stream weight chunks; pad H to a multiple of
        # th with zeros (gelu(0) == 0, so padded hidden units contribute 0).
        th = _pick_hidden_tile(H, th_max, C, wsz, budget)
        H_pad = _round_up(H, th)
        w_fc_p, b_fc_p, w_proj_p = w_fc, b_fc, w_proj
        if H_pad != H:
            w_fc_p = jnp.pad(w_fc, ((0, 0), (0, H_pad - H)))
            b_fc_p = jnp.pad(b_fc, ((0, 0), (0, H_pad - H)))
            w_proj_p = jnp.pad(w_proj, ((0, H_pad - H), (0, 0)))

        grid = (M_pad // tm_eff, H_pad // th)
        kernel = functools.partial(_mlp_kernel_chunked, gelu_dtype=gelu_dtype)
        in_specs = [
            pl.BlockSpec((tm_eff, C), lambda i, h: (i, 0)),  # x tile
            pl.BlockSpec((C, th), lambda i, h: (0, h)),      # w_fc chunk
            pl.BlockSpec((1, th), lambda i, h: (0, h)),      # b_fc chunk
            pl.BlockSpec((th, C), lambda i, h: (h, 0)),      # w_proj chunk
            pl.BlockSpec((1, C), lambda i, h: (0, 0)),       # b_proj
        ]
        out_specs = pl.BlockSpec((tm_eff, C), lambda i, h: (i, 0))
        scratch_shapes = [pltpu.VMEM((tm_eff, C), jnp.float32)]
        dims = ("parallel", "arbitrary")
        est = (
            2 * tm_eff * C * xsz                  # x tiles
            + 2 * tm_eff * C * xsz                # output tiles
            + 2 * (C * th + th) * wsz             # w_fc + b_fc chunks
            + 2 * (th * C + C) * wsz              # w_proj + b_proj chunks
            + tm_eff * C * 4                      # f32 accumulator scratch
            + tm_eff * th * 4                     # f32 intermediate
            + tm_eff * th * wsz                   # cast copy headroom
        )
        args = (x2, w_fc_p, b_fc_p, w_proj_p, b_proj)

    vmem_limit = int(min(max(int(est * 1.25), 32 * 1024 * 1024), budget))

    # TODO(synk): for C not a multiple of 128 (e.g. GPT-2 XL C=1600) consider
    # padding C to 128 in the wrapper to avoid masked lanes on stores.
    out2 = pl.pallas_call(
        kernel,
        out_shape=jax.ShapeDtypeStruct((M_pad, C), x.dtype),
        grid_spec=pltpu.PrefetchScalarGridSpec(
            num_scalar_prefetch=0,
            grid=grid,
            in_specs=in_specs,
            out_specs=out_specs,
            scratch_shapes=scratch_shapes,
        ),
        compiler_params=pltpu.CompilerParams(
            dimension_semantics=dims,
            vmem_limit_bytes=vmem_limit,
        ),
    )(*args)

    return out2[:M].reshape(B, T, C)


# --------------------------------------------------------------------------
# Reference + tests
# --------------------------------------------------------------------------
def _reference(x, w_fc, b_fc, w_proj, b_proj):
    h = jnp.dot(x, w_fc) + b_fc
    g = _gelu_tanh(h)
    return jnp.dot(g, w_proj) + b_proj


if __name__ == "__main__":
    key = jax.random.PRNGKey(0)
    kx, kw1, kw2, kx2, kw3, kw4, kx3, kw5, kw6 = jax.random.split(key, 9)

    # --- Test 1: small GPT-2-ish config, f32, weight-resident fast path. ---
    B, T, C = 2, 8, 32
    H = 4 * C
    x = jax.random.normal(kx, (B, T, C), dtype=jnp.float32)
    w_fc = 0.02 * jax.random.normal(kw1, (C, H), dtype=jnp.float32)
    b_fc = jnp.zeros((1, H), dtype=jnp.float32)
    w_proj = 0.02 * jax.random.normal(kw2, (H, C), dtype=jnp.float32)
    b_proj = jnp.zeros((1, C), dtype=jnp.float32)

    out = jax.block_until_ready(mlp_forward(x, w_fc, b_fc, w_proj, b_proj))
    ref = _reference(x.reshape(B * T, C), w_fc, b_fc, w_proj, b_proj).reshape(B, T, C)
    assert out.shape == (B, T, C)
    assert jnp.allclose(out, ref, atol=1e-5, rtol=1e-5), "test1 mismatch vs reference"

    # --- Test 2: row padding (M=10) + forced hidden-chunked accumulation. ---
    B2, T2, C2 = 2, 5, 128
    H2 = 4 * C2
    x_b = jax.random.normal(kx2, (B2, T2, C2), dtype=jnp.float32)
    w_fc_b = 0.02 * jax.random.normal(kw3, (C2, H2), dtype=jnp.float32)
    b_fc_b = 0.01 * jnp.ones((1, H2), dtype=jnp.float32)
    w_proj_b = 0.02 * jax.random.normal(kw4, (H2, C2), dtype=jnp.float32)
    b_proj_b = 0.01 * jnp.ones((1, C2), dtype=jnp.float32)

    out_b = jax.block_until_ready(
        mlp_forward(x_b, w_fc_b, b_fc_b, w_proj_b, b_proj_b,
                    th_max=128, weight_resident=False)
    )
    ref_b = _reference(
        x_b.reshape(B2 * T2, C2), w_fc_b, b_fc_b, w_proj_b, b_proj_b
    ).reshape(B2, T2, C2)
    assert out_b.shape == (B2, T2, C2)
    assert jnp.allclose(out_b, ref_b, atol=1e-4, rtol=1e-4), "test2 mismatch"

    # --- Test 3: bf16 inputs/weights (bf16 MXU + bf16 GELU path). ---
    B3, T3, C3 = 2, 8, 64
    H3 = 4 * C3
    x_c = jax.random.normal(kx3, (B3, T3, C3), dtype=jnp.bfloat16)
    w_fc_c = (0.02 * jax.random.normal(kw5, (C3, H3))).astype(jnp.bfloat16)
    b_fc_c = jnp.full((1, H3), 0.01, dtype=jnp.bfloat16)
    w_proj_c = (0.02 * jax.random.normal(kw6, (H3, C3))).astype(jnp.bfloat16)
    b_proj_c = jnp.full((1, C3), 0.01, dtype=jnp.bfloat16)

    out_c = jax.block_until_ready(
        mlp_forward(x_c, w_fc_c, b_fc_c, w_proj_c, b_proj_c)
    )
    ref_c = _reference(
        x_c.reshape(B3 * T3, C3).astype(jnp.float32),
        w_fc_c.astype(jnp.float32), b_fc_c.astype(jnp.float32),
        w_proj_c.astype(jnp.float32), b_proj_c.astype(jnp.float32),
    ).reshape(B3, T3, C3)
    assert out_c.shape == (B3, T3, C3)
    assert jnp.allclose(out_c.astype(jnp.float32), ref_c, atol=2e-2, rtol=2e-2), \
        "test3 (bf16) mismatch vs reference"

    print("KERNEL_OK")
</pallas_src>

<mosaic_0001>
module attributes {stable_mosaic.version = 11 : i64} {
  func.func @_mlp_kernel_resident(%arg0: i32, %arg1: memref<8x32xf32, #tpu.memory_space<vmem>>, %arg2: memref<32x128xf32, #tpu.memory_space<vmem>>, %arg3: memref<1x128xf32, #tpu.memory_space<vmem>>, %arg4: memref<128x32xf32, #tpu.memory_space<vmem>>, %arg5: memref<1x32xf32, #tpu.memory_space<vmem>>, %arg6: memref<8x32xf32, #tpu.memory_space<vmem>>) attributes {dimension_semantics = [#tpu.dimension_semantics<parallel>], iteration_bounds = array<i64: 2>, scalar_prefetch = 0 : i64, scratch_operands = 0 : i64, tpu.core_type = #tpu.core_type<tc>, window_params = [{transform_indices = @transform_0, window_bounds = array<i64: 8, 32>}, {pipeline_mode = #tpu.pipeline_mode<synchronous>, transform_indices = @transform_1, window_bounds = array<i64: 32, 128>}, {pipeline_mode = #tpu.pipeline_mode<synchronous>, transform_indices = @transform_2, window_bounds = array<i64: 1, 128>}, {pipeline_mode = #tpu.pipeline_mode<synchronous>, transform_indices = @transform_3, window_bounds = array<i64: 128, 32>}, {pipeline_mode = #tpu.pipeline_mode<synchronous>, transform_indices = @transform_4, window_bounds = array<i64: 1, 32>}, {transform_indices = @transform_5, window_bounds = array<i64: 8, 32>}]} {
    %c0 = arith.constant 0 : index
    %c0_0 = arith.constant 0 : index
    %0 = vector.load %arg1[%c0, %c0_0] : memref<8x32xf32, #tpu.memory_space<vmem>>, vector<8x32xf32>
    %c0_1 = arith.constant 0 : index
    %c0_2 = arith.constant 0 : index
    %1 = vector.load %arg2[%c0_1, %c0_2] : memref<32x128xf32, #tpu.memory_space<vmem>>, vector<32x128xf32>
    %cst = arith.constant dense<0.000000e+00> : vector<8x128xf32>
    %2 = tpu.matmul %0, %1, %cst {dimension_numbers = #tpu.dot_dimension_numbers<[1], [0], [0], [1], [0, 0, 1, 1], [], []>} : vector<8x32xf32>, vector<32x128xf32>, vector<8x128xf32> -> vector<8x128xf32>
    %c0_3 = arith.constant 0 : index
    %c0_4 = arith.constant 0 : index
    %3 = vector.load %arg3[%c0_3, %c0_4] : memref<1x128xf32, #tpu.memory_space<vmem>>, vector<1x128xf32>
    %4 = vector.broadcast %3 : vector<1x128xf32> to vector<8x128xf32>
    %5 = arith.addf %2, %4 : vector<8x128xf32>
    %6 = arith.mulf %5, %5 : vector<8x128xf32>
    %cst_5 = arith.constant 0.0356774069 : f32
    %7 = vector.broadcast %cst_5 : f32 to vector<8x128xf32>
    %8 = arith.mulf %7, %6 : vector<8x128xf32>
    %cst_6 = arith.constant 0.797884583 : f32
    %9 = vector.broadcast %cst_6 : f32 to vector<8x128xf32>
    %10 = arith.addf %9, %8 : vector<8x128xf32>
    %11 = arith.mulf %5, %10 : vector<8x128xf32>
    %cst_7 = arith.constant 5.000000e-01 : f32
    %12 = vector.broadcast %cst_7 : f32 to vector<8x128xf32>
    %13 = arith.mulf %12, %5 : vector<8x128xf32>
    %14 = math.tanh %11 : vector<8x128xf32>
    %cst_8 = arith.constant 1.000000e+00 : f32
    %15 = vector.broadcast %cst_8 : f32 to vector<8x128xf32>
    %16 = arith.addf %15, %14 : vector<8x128xf32>
    %17 = arith.mulf %13, %16 : vector<8x128xf32>
    %c0_9 = arith.constant 0 : index
    %c0_10 = arith.constant 0 : index
    %18 = vector.load %arg4[%c0_9, %c0_10] : memref<128x32xf32, #tpu.memory_space<vmem>>, vector<128x32xf32>
    %cst_11 = arith.constant dense<0.000000e+00> : vector<8x32xf32>
    %19 = tpu.matmul %17, %18, %cst_11 {dimension_numbers = #tpu.dot_dimension_numbers<[1], [0], [0], [1], [0, 0, 1, 1], [], []>} : vector<8x128xf32>, vector<128x32xf32>, vector<8x32xf32> -> vector<8x32xf32>
    %c0_12 = arith.constant 0 : index
    %c0_13 = arith.constant 0 : index
    %20 = vector.load %arg5[%c0_12, %c0_13] : memref<1x32xf32, #tpu.memory_space<vmem>>, vector<1x32xf32>
    %21 = vector.broadcast %20 : vector<1x32xf32> to vector<8x32xf32>
    %22 = arith.addf %19, %21 : vector<8x32xf32>
    %c0_14 = arith.constant 0 : index
    %c0_15 = arith.constant 0 : index
    %23 = vector.load %arg6[%c0_14, %c0_15] : memref<8x32xf32, #tpu.memory_space<vmem>>, vector<8x32xf32>
    tpu.vector_store %arg6[%c0_14, %c0_15], %22 {strides = array<i32>} : memref<8x32xf32, #tpu.memory_space<vmem>>, vector<8x32xf32>,
    return
  }
  func.func @transform_0(%arg0: i32) -> (i32, i32) {
    %c0_i32 = arith.constant 0 : i32
    %c0_i32_0 = arith.constant 0 : i32
    return %arg0, %c0_i32 : i32, i32
  }
  func.func @transform_1(%arg0: i32) -> (i32, i32) {
    %c0_i32 = arith.constant 0 : i32
    %c0_i32_0 = arith.constant 0 : i32
    %c0_i32_1 = arith.constant 0 : i32
    return %c0_i32, %c0_i32_0 : i32, i32
  }
  func.func @transform_2(%arg0: i32) -> (i32, i32) {
    %c0_i32 = arith.constant 0 : i32
    %c0_i32_0 = arith.constant 0 : i32
    %c0_i32_1 = arith.constant 0 : i32
    return %c0_i32, %c0_i32_0 : i32, i32
  }
  func.func @transform_3(%arg0: i32) -> (i32, i32) {
    %c0_i32 = arith.constant 0 : i32
    %c0_i32_0 = arith.constant 0 : i32
    %c0_i32_1 = arith.constant 0 : i32
    return %c0_i32, %c0_i32_0 : i32, i32
  }
  func.func @transform_4(%arg0: i32) -> (i32, i32) {
    %c0_i32 = arith.constant 0 : i32
    %c0_i32_0 = arith.constant 0 : i32
    %c0_i32_1 = arith.constant 0 : i32
    return %c0_i32, %c0_i32_0 : i32, i32
  }
  func.func @transform_5(%arg0: i32) -> (i32, i32) {
    %c0_i32 = arith.constant 0 : i32
    %c0_i32_0 = arith.constant 0 : i32
    return %arg0, %c0_i32 : i32, i32
  }
}

</mosaic_0001>

<bundles_post_ra>
// kernel: mlp_forward.1
= control target key start
LH: loop header
LB: loop body
LE: loop exit
PB: predicated region body
PF: predicated region fallthrough
CT: control target
= control target key end

     0   :  { %10 = vsyncpa [#allocation3], 0  ;;  %s883_s0 = inlined_call_operand.vmem [shape: f32[16,32], index: 0, kind: input, shape index: {}]   ;;  %s884_s1 = inlined_call_operand.vmem [shape: f32[32,128], index: 1, kind: input, shape index: {}]   ;;  %s885_s2 = inlined_call_operand.vmem [shape: f32[1,128], index: 2, kind: input, shape index: {}]   ;;  %s886_s3 = inlined_call_operand.vmem [shape: f32[128,32], index: 3, kind: input, shape index: {}]   ;;  %s887_s4 = inlined_call_operand.vmem [shape: f32[1,32], index: 4, kind: input, shape index: {}]   ;;  %s888_s5 = inlined_call_operand.hbm [shape: f32[16,32], index: 5, kind: output, shape index: {}]  }
   0x1   :  { %12 = vsyncpa [#allocation3 + $0x1], 0  ;;  %s700_s18 = smov 0   ;;  %s702_s19 = smov 0  }
   0x2   :  { %s704_s20 = smov 0   ;;  %s706_s21 = smov 0  }
   0x3 LB: > { %s721_s22 = sadd.s32 4294967295, %s665_s21   ;;  %s481_s23 = sadd.s32 4294967294, %s665_s21   ;;  %s665_s21 = sphi %s706_s21, %s894_s21   ;;  %s661_s20 = sphi %s704_s20, %s893_s20   ;;  %s657_s19 = sphi %s702_s19, %s892_s19   ;;  %s653_s18 = sphi %s700_s18, %s891_s18  }
   0x4   : > { %s725_s24 = sadd.s32 1, %s665_s21   ;;  %s135_s25 = sadd.s32 1, %s661_s20 }
   0x5   : > { %s132_s26 = ssub.s32 %s665_s21, %s725_s24  ;;  %p145_p0 = scmp.ne.s32.totalorder %s661_s20, %s657_s19 }
   0x6   : > { %p133_p1 = scmp.eq.s32.totalorder %s132_s26, 0  ;;  %p146_p2 = scmp.eq.s32.totalorder %s721_s22, 1 }
   0x7   : > { %p151_p3 = scmp.ne.s32.totalorder %s657_s19, %s653_s18  ;;  %p152_p4 = scmp.eq.s32.totalorder %s481_s23, 1 }
   0x8   : > { %s736_s27 = scalar_select %p133_p1, %s661_s20, %s135_s25  }
   0x9   : > { %p738_p5 = por %p146_p2, %p145_p0  ;;  %p742_p6 = por %p152_p4, %p151_p3 }
   0xa   : > { %p484_p7 = scmp.ge.s32.totalorder %s665_s21, 1  ;;  %p189_p8 = scmp.lt.s32.totalorder %s665_s21, 3 }
   0xc   : > { %p190_p9 = pnand %p484_p7, %p189_p8 }
   0xd   : > { %p216_p10 = scmp.lt.s32.totalorder (!%p190_p9), %s721_s22, 1  ;;  %s213_s26 = sand.u32 (!%p190_p9), 1, %s657_s19  }
   0xe   : > { %193 = sbr.rel (%p190_p9) target bundleno = 457 (0x1c9), region = 40  ;;  %s485_s30 = sshll.u32 (!%p190_p9), %s213_s26, 3 }
   0xf   : > { %s491_s8 = sshll.u32 (!%p190_p9), %s721_s22, 7  ;;  %s215_s9 = scalar_lea.vmem (!%p190_p9), [#allocation2], %s485_s30 }
  0x10   : > { %s422_s10 = sshll.u32 (!%p190_p9), %s215_s9, 4  ;;  %s847_s13 = scalar_lea.hbm (!%p190_p9), %s888_s5, %s491_s8  ;;  %s423_s10 = int_to_ptr.vmem [resolvable:$true] %s422_s10 }
  0x11   : > { %s605_s15 = scalar_lea.vmem (!%p190_p9), %s423_s10, 128 }
  0x12   : > { %p606_p11 = scmp.ne.s32.totalorder (!%p190_p9), %s423_s10, %s605_s15 }
  0x13   : > { %v224_v0 = vld [vmem:[%s884_s1 + $0x18] sm:$0xff]  ;;  %v667_v1 = vmov 0.0   ;;  %v223_v2 = vld [vmem:[%s884_s1 + $0x10] sm:$0xff]  ;;  %vm668_vm0 = vmmov 0   ;;  %s217_s11 = scalar_select %p216_p10, %s721_s22, 1  ;;  %v222_v4 = vld [vmem:[%s884_s1 + $0x8] sm:$0xff] }
  0x14   : > { %516 = vmatprep.subr.mxu0 %v667_v1  ;;  %524 = vmatprep.mubr.msk.f32.mxu0 %vm668_vm0, %v667_v1  ;;  %v329_v3 = vld [vmem:[%s886_s3 + $0x78] sm:$0xff]  ;;  %v221_v5 = vld [vmem:[%s884_s1] sm:$0xff]  ;;  %vm232_vm1 = vcmask 261120   ;;  %v328_v7 = vld [vmem:[%s886_s3 + $0x70] sm:$0xff]  ;;  %p607_p12 = pnand %p606_p11, %p738_p5  ;;  %s669_s22 = smov [#allocation2]  }
  0x15   : > { %517 = vmatpush3.msra.mxu0 %v224_v0  ;;  %527 = vmatprep.subr.mxu1 %v667_v1  ;;  %s486_s14 = sshll.u32 %s217_s11, 3  ;;  %v327_v8 = vld [vmem:[%s886_s3 + $0x68] sm:$0xff]  ;;  %v326_v9 = vld [vmem:[%s886_s3 + $0x60] sm:$0xff]  ;;  %v325_v10 = vld [vmem:[%s886_s3 + $0x58] sm:$0xff]  ;;  %s609_s16 = sshll.u32 %s669_s22, 4  ;;  %s610_s16 = int_to_ptr.vmem [resolvable:$false] %s609_s16 }
  0x16   : > { %518 = vmatprep.subr.mxu0 %v667_v1  ;;  %528 = vmatpush3.msra.mxu1 %v329_v3  ;;  %s219_s25 = scalar_lea.vmem %s883_s0, %s486_s14  ;;  %v324_v11 = vld [vmem:[%s886_s3 + $0x50] sm:$0xff]  ;;  %v323_v12 = vld [vmem:[%s886_s3 + $0x48] sm:$0xff]  ;;  %v322_v13 = vld [vmem:[%s886_s3 + $0x40] sm:$0xff]  ;;  %s409_s14 = scalar_lea.sflag [#allocation3], %s213_s26 }
  0x17   : > { %519 = vmatpush3.msra.mxu0 %v223_v2  ;;  %529 = vmatprep.subr.mxu1 %v667_v1  ;;  %v220_v6 = vld [vmem:[%s219_s25] sm:$0xff]  ;;  %v321_v14 = vld [vmem:[%s886_s3 + $0x38] sm:$0xff]  ;;  %v320_v15 = vld [vmem:[%s886_s3 + $0x30] sm:$0xff]  ;;  %p608_p13 = pneg %p607_p12  ;;  %s611_s17 = scalar_lea.vmem %s610_s16, 256 }
  0x18   : > { %520 = vmatprep.subr.mxu0 %v667_v1  ;;  %559 = vmatprep.mubr.msk.f32.mxu1 %vm668_vm0, %v667_v1  ;;  %v319_v16 = vld [vmem:[%s886_s3 + $0x28] sm:$0xff]  ;;  %v318_v17 = vld [vmem:[%s886_s3 + $0x20] sm:$0xff]  ;;  %v317_v18 = vld [vmem:[%s886_s3 + $0x18] sm:$0xff]  ;;  %p612_p0 = scmp.lt.s32.totalorder %s423_s10, %s610_s16  ;;  %p613_p1 = scmp.lt.s32.totalorder %s611_s17, %s605_s15 }
  0x19   : > { %521 = vmatpush3.msra.mxu0 %v222_v4  ;;  %530 = vmatpush3.msra.mxu1 %v328_v7  ;;  %v316_v19 = vld [vmem:[%s886_s3 + $0x10] sm:$0xff]  ;;  %v315_v20 = vld [vmem:[%s886_s3 + $0x8] sm:$0xff]  ;;  %v314_v21 = vld [vmem:[%s886_s3] sm:$0xff] }
  0x1a   : > { %522 = vmatprep.subr.mxu0 %v667_v1  ;;  %531 = vmatprep.subr.mxu1 %v667_v1  ;;  %v487_v22 = vld [vmem:[%s885_s2] ss:$0 sm:$0xff]  ;;  %p614_p2 = por %p613_p1, %p612_p0 }
  0x1b   : > { %523 = vmatpush3.msra.mxu0 %v221_v5  ;;  %532 = vmatpush3.msra.mxu1 %v327_v8  ;;  %v489_v34 = vld [vmem:[%s887_s4] ss:$0 sm:$0xff] }
  0x1c   : > { %525 = vmatmul.mubr.msk.f32.vlgmr.msra.gmra.mxu0 %vm232_vm1, %v220_v6  ;;  %533 = vmatprep.subr.mxu1 %v667_v1  ;;  %p615_p3 = pnand %p614_p2, %p608_p13 }
  0x1d   : > { %534 = vmatpush3.msra.mxu1 %v326_v9 }
  0x1e   : > { %535 = vmatprep.subr.mxu1 %v667_v1 }
  0x1f   : > { %536 = vmatpush3.msra.mxu1 %v325_v10 }
  0x20   : > { %537 = vmatprep.subr.mxu1 %v667_v1 }
  0x21   : > { %538 = vmatpush3.msra.mxu1 %v324_v11 }
  0x22   : > { %539 = vmatprep.subr.mxu1 %v667_v1 }
  0x23   : > { %540 = vmatpush3.msra.mxu1 %v323_v12 }
  0x24   : > { %541 = vmatprep.subr.mxu1 %v667_v1 }
  0x25   : > { %542 = vmatpush3.msra.mxu1 %v322_v13 }
  0x26   : > { %543 = vmatprep.subr.mxu1 %v667_v1 }
  0x27   : > { %544 = vmatpush3.msra.mxu1 %v321_v14 }
  0x28   : > { %545 = vmatprep.subr.mxu1 %v667_v1 }
  0x29   : > { %546 = vmatpush3.msra.mxu1 %v320_v15 }
  0x2a   : > { %547 = vmatprep.subr.mxu1 %v667_v1 }
  0x2b   : > { %548 = vmatpush3.msra.mxu1 %v319_v16 }
  0x2c   : > { %549 = vmatprep.subr.mxu1 %v667_v1 }
  0x2d   : > { %550 = vmatpush3.msra.mxu1 %v318_v17 }
  0x2e   : > { %551 = vmatprep.subr.mxu1 %v667_v1 }
  0x2f   : > { %552 = vmatpush3.msra.mxu1 %v317_v18 }
  0x30   : > { %553 = vmatprep.subr.mxu1 %v667_v1 }
  0x31   : > { %554 = vmatpush3.msra.mxu1 %v316_v19 }
  0x32   : > { %555 = vmatprep.subr.mxu1 %v667_v1 }
  0x33   : > { %556 = vmatpush3.msra.mxu1 %v315_v20 }
  0x34   : > { %557 = vmatprep.subr.mxu1 %v667_v1 }
  0x35   : > { %558 = vmatpush3.msra.mxu1 %v314_v21 }
  0xdc   : > { %v302_v23 = vpop.f32.mrf.mxu0 }
  0xdd   : > { %v303_v24 = vadd.f32 %v487_v22, %v302_v23 }
  0xde   : > { %v526_v25 = vpop.f32.mrf.mxu0 }
  0xdf   : > { %v306_v26 = vmul.f32 %v303_v24, %v303_v24  ;;  %v310_v31 = vmul.f32 0.5, %v303_v24 }
  0xe1   : > { %v307_v27 = vmul.f32 0.035677407, %v306_v26 }
  0xe3   : > { %v308_v28 = vadd.f32 0.7978846, %v307_v27 }
  0xe5   : > { %v309_v29 = vmul.f32 %v308_v28, %v303_v24 }
  0xe7   : > { %603 = vtanh.f32 %v309_v29 }
  0xf4   : > { %v604_v30 = vpop.eup %603 }
  0xf5   : > { %v312_v32 = vadd.f32 1.0, %v604_v30 }
  0xf7   : > { %v313_v33 = vmul.f32 %v312_v32, %v310_v31 }
  0xf9   : > { %560 = vmatmul.mubr.f32.vlgmr.msra.gmra.mxu1 %v313_v33 }
 0x1b9   : > { %v403_v35 = vpop.f32.mrf.mxu1 }
 0x1ba   : > { %v404_v36 = vadd.f32 %v489_v34, %v403_v35 }
 0x1bb   : > { %v561_v37 = vpop.f32.mrf.mxu1 }
 0x1bc   : > { %407 = vst.msk [vmem:[%s215_s9] sm:$0xff] %vm232_vm1, %v404_v36 }
 0x1bd   : > { %618 = shalt.err (!%p615_p3)
}
 0x1be   : > { %s619_s23 = scalar_lea.hbm %s847_s13, 128  ;;  %s623_s30 = scalar_lea.hbm %s888_s5, 256 }
 0x1bf   : > { %p620_p4 = scmp.ne.s32.totalorder %s847_s13, %s619_s23  ;;  %p624_p9 = scmp.lt.s32.totalorder %s847_s13, %s888_s5 }
 0x1c0   : > { %p625_p10 = scmp.lt.s32.totalorder %s623_s30, %s619_s23 }
 0x1c1   : > { %p621_p7 = pnand %p620_p4, %p738_p5 }
 0x1c2   : > { %p626_p11 = por %p625_p10, %p624_p9 }
 0x1c3   : > { %p622_p8 = pneg %p621_p7 }
 0x1c5   : > { %p627_p12 = pnand %p626_p11, %p622_p8 }
 0x1c7   : > { %630 = shalt.err (!%p627_p12)
}
 0x1c8   : > { %562 = dma.vmem_to_hbm [thread:$0]  (%p738_p5), %s423_s10, 128, %s847_s13, %s409_s14  }
 0x1c9 PF: > { %p568_p13 = scmp.ge.s32.totalorder %s665_s21, 2  ;;  %s434_s8 = sand.u32 1, %s653_s18  }
 0x1ca   : > { %s435_s9 = scalar_lea.sflag [#allocation3], %s434_s8 }
 0x1cb   : > { %p565_p0 = pnand %p568_p13, %p742_p6 }
 0x1cd   : > { %p566_p1 = pneg %p565_p0 }
 0x1cf   : > { %648 = dma.done.wait (%p566_p1), %s435_s9, 128  }
 0x1d0   : > { %650 = vsyncadd (%p566_p1), %s435_s9, 4294967168  ;;  %p15_p2 = scmp.ge.s32.totalorder %s725_s24, 4   ;;  %s891_s18 = smov %s657_s19 }
 0x1d1   : > { %s892_s19 = smov %s661_s20  ;;  %s893_s20 = smov %s736_s27 }
 0x1d2   : > { %s894_s21 = smov %s725_s24  ;;  %17 = sbr.rel (!%p15_p2) target bundleno = 3 (0x3), region = 75 }
 0x1d7   :  { %440 = vsyncpa [#allocation3], 1 }
 0x1d8   :  { %442 = vsyncpa [#allocation3 + $0x1], 1 }

</bundles_post_ra>
